<compile_context>
chip_gen: v6e
topology: v6e:2x2x1
jax: 0.10.0
libtpu: 0.0.40
codegen_flags: <defaults>
</compile_context>

<pallas_src>
import functools
import math

import jax
import jax.numpy as jnp
from jax import lax
from jax.experimental import pallas as pl
from jax.experimental.pallas import tpu as pltpu


def _full_attention0_kernel(q_ref, k_ref, v_ref, o_ref, *, num_heads, head_dim, scale):
    # q_ref: [1, Q, H*D];  k_ref / v_ref: [1, W, H*D];  o_ref: [1, Q, H*D]
    q = q_ref[0].astype(jnp.float32)            # [Q, H*D]
    k = k_ref[0].astype(jnp.float32)            # [W, H*D]
    v = v_ref[0].astype(jnp.float32)            # [W, H*D]

    # sum over the values' sequence axis ('e' in the reference einsum),
    # all heads at once (single sublane reduction).
    v_sum = jnp.sum(v, axis=0, keepdims=True)   # [1, H*D]

    out_heads = []
    for h in range(num_heads):                  # static, unrolled (H is small)
        sl = slice(h * head_dim, (h + 1) * head_dim)
        # Fold softmax_temp into q: [Q, D] multiply instead of scaling [Q, W].
        qh = q[:, sl] * scale                   # [Q, D]
        kh = k[:, sl]                           # [W, D]
        # QK^T contracting the trailing D dims directly (no k.T relayout).
        s = lax.dot_general(qh, kh, (((1,), (1,)), ((), ())),
                            preferred_element_type=jnp.float32)   # [Q, W]
        # softmax over the key axis ('w'); exact division to stay inside the
        # 1e-5 tolerance (approx reciprocal would be borderline here).
        s = s - jnp.max(s, axis=-1, keepdims=True)
        p = jnp.exp(s)
        a = p / jnp.sum(p, axis=-1, keepdims=True)
        # 'mqwh,mehd->mqhd': 'w' of A and 'e' of V are reduced independently.
        row = jnp.sum(a, axis=-1, keepdims=True)                  # [Q, 1]
        out_heads.append(row * v_sum[:, sl])                      # [Q, D]

    # One lane-dense [Q, H*D] store (unmasked, full-width).
    o_ref[0] = jnp.concatenate(out_heads, axis=-1).astype(o_ref.dtype)


def full_attention0(queries, keys, values, *, use_dropout=False):
    """Pallas TPU forward of FullAttention0 (inference path)."""
    # TODO(synk): dropout on A (use_dropout=True) not implemented; module default is False.
    M, Q, H, D = queries.shape
    W = keys.shape[1]
    assert keys.shape == (M, W, H, D)
    assert values.shape == (M, W, H, D)

    scale = 1.0 / math.sqrt(D)
    HD = H * D

    # Free, contiguous reshapes — no HBM transposes.
    q2 = queries.reshape(M, Q, HD)
    k2 = keys.reshape(M, W, HD)
    v2 = values.reshape(M, W, HD)

    kernel = functools.partial(
        _full_attention0_kernel, num_heads=H, head_dim=D, scale=scale)

    out2 = pl.pallas_call(
        kernel,
        out_shape=jax.ShapeDtypeStruct((M, Q, HD), queries.dtype),
        grid_spec=pltpu.PrefetchScalarGridSpec(
            num_scalar_prefetch=0,
            grid=(M,),
            in_specs=[
                pl.BlockSpec((1, Q, HD), lambda m: (m, 0, 0)),
                pl.BlockSpec((1, W, HD), lambda m: (m, 0, 0)),
                pl.BlockSpec((1, W, HD), lambda m: (m, 0, 0)),
            ],
            out_specs=pl.BlockSpec((1, Q, HD), lambda m: (m, 0, 0)),
        ),
        compiler_params=pltpu.CompilerParams(
            dimension_semantics=("parallel",),
        ),
    )(q2, k2, v2)

    # Free reshape back to [M, Q, H, D] (matches .contiguous() of the module).
    return out2.reshape(M, Q, H, D)


def _reference(queries, keys, values):
    # Verbatim port of the PyTorch module (use_dropout=False path).
    QK = jnp.einsum('mqhd,mwhd->mqwh', queries, keys)
    softmax_temp = 1.0 / queries.shape[3] ** 0.5
    A = jax.nn.softmax(softmax_temp * QK, axis=2)
    return jnp.einsum('mqwh,mehd->mqhd', A, values)


if __name__ == "__main__":
    M, Q, W, H, D = 2, 8, 8, 4, 32

    key = jax.random.PRNGKey(0)
    kq, kk, kv = jax.random.split(key, 3)
    queries = jax.random.normal(kq, (M, Q, H, D), dtype=jnp.float32)
    keys = jax.random.normal(kk, (M, W, H, D), dtype=jnp.float32)
    values = jax.random.normal(kv, (M, W, H, D), dtype=jnp.float32)

    out = full_attention0(queries, keys, values)
    out = jax.block_until_ready(out)

    ref = _reference(queries, keys, values)
    assert out.shape == (M, Q, H, D)
    assert jnp.allclose(out, ref, atol=1e-5, rtol=1e-5), "mismatch vs reference"

    print("KERNEL_OK")
</pallas_src>

<mosaic_0001>
module attributes {stable_mosaic.version = 11 : i64} {
  func.func @_full_attention0_kernel(%arg0: i32, %arg1: memref<1x8x128xf32, #tpu.memory_space<vmem>>, %arg2: memref<1x8x128xf32, #tpu.memory_space<vmem>>, %arg3: memref<1x8x128xf32, #tpu.memory_space<vmem>>, %arg4: memref<1x8x128xf32, #tpu.memory_space<vmem>>) attributes {dimension_semantics = [#tpu.dimension_semantics<parallel>], iteration_bounds = array<i64: 2>, scalar_prefetch = 0 : i64, scratch_operands = 0 : i64, tpu.core_type = #tpu.core_type<tc>, window_params = [{transform_indices = @transform_0, window_bounds = array<i64: 1, 8, 128>}, {transform_indices = @transform_1, window_bounds = array<i64: 1, 8, 128>}, {transform_indices = @transform_2, window_bounds = array<i64: 1, 8, 128>}, {transform_indices = @transform_3, window_bounds = array<i64: 1, 8, 128>}]} {
    %c0 = arith.constant 0 : index
    %c0_0 = arith.constant 0 : index
    %c0_1 = arith.constant 0 : index
    %0 = vector.load %arg1[%c0, %c0_0, %c0_1] : memref<1x8x128xf32, #tpu.memory_space<vmem>>, vector<1x8x128xf32>
    %1 = vector.shape_cast %0 : vector<1x8x128xf32> to vector<8x128xf32>
    %c0_2 = arith.constant 0 : index
    %c0_3 = arith.constant 0 : index
    %c0_4 = arith.constant 0 : index
    %2 = vector.load %arg2[%c0_2, %c0_3, %c0_4] : memref<1x8x128xf32, #tpu.memory_space<vmem>>, vector<1x8x128xf32>
    %3 = vector.shape_cast %2 : vector<1x8x128xf32> to vector<8x128xf32>
    %c0_5 = arith.constant 0 : index
    %c0_6 = arith.constant 0 : index
    %c0_7 = arith.constant 0 : index
    %4 = vector.load %arg3[%c0_5, %c0_6, %c0_7] : memref<1x8x128xf32, #tpu.memory_space<vmem>>, vector<1x8x128xf32>
    %5 = vector.shape_cast %4 : vector<1x8x128xf32> to vector<8x128xf32>
    %cst = arith.constant dense<0.000000e+00> : vector<128xf32>
    %6 = vector.multi_reduction <add>, %5, %cst [0] : vector<8x128xf32> to vector<128xf32>
    %7 = vector.shape_cast %6 : vector<128xf32> to vector<1x128xf32>
    %8 = vector.extract_strided_slice %1 {offsets = [0, 0], sizes = [8, 32], strides = [1, 1]} : vector<8x128xf32> to vector<8x32xf32>
    %cst_8 = arith.constant 0.176776692 : f32
    %9 = vector.broadcast %cst_8 : f32 to vector<8x32xf32>
    %10 = arith.mulf %8, %9 : vector<8x32xf32>
    %11 = vector.extract_strided_slice %3 {offsets = [0, 0], sizes = [8, 32], strides = [1, 1]} : vector<8x128xf32> to vector<8x32xf32>
    %cst_9 = arith.constant dense<0.000000e+00> : vector<8x8xf32>
    %12 = tpu.matmul %10, %11, %cst_9 {dimension_numbers = #tpu.dot_dimension_numbers<[1], [1], [0], [0], [0, 0, 1, 0], [], []>} : vector<8x32xf32>, vector<8x32xf32>, vector<8x8xf32> -> vector<8x8xf32>
    %cst_10 = arith.constant dense<0xFF800000> : vector<8xf32>
    %13 = vector.multi_reduction <maximumf>, %12, %cst_10 [1] : vector<8x8xf32> to vector<8xf32>
    %14 = vector.shape_cast %13 : vector<8xf32> to vector<8x1xf32>
    %15 = vector.broadcast %14 : vector<8x1xf32> to vector<8x8xf32>
    %16 = arith.subf %12, %15 : vector<8x8xf32>
    %17 = math.exp %16 : vector<8x8xf32>
    %cst_11 = arith.constant dense<0.000000e+00> : vector<8xf32>
    %18 = vector.multi_reduction <add>, %17, %cst_11 [1] : vector<8x8xf32> to vector<8xf32>
    %19 = vector.shape_cast %18 : vector<8xf32> to vector<8x1xf32>
    %20 = vector.broadcast %19 : vector<8x1xf32> to vector<8x8xf32>
    %21 = arith.divf %17, %20 : vector<8x8xf32>
    %cst_12 = arith.constant dense<0.000000e+00> : vector<8xf32>
    %22 = vector.multi_reduction <add>, %21, %cst_12 [1] : vector<8x8xf32> to vector<8xf32>
    %23 = vector.shape_cast %22 : vector<8xf32> to vector<8x1xf32>
    %24 = vector.extract_strided_slice %7 {offsets = [0, 0], sizes = [1, 32], strides = [1, 1]} : vector<1x128xf32> to vector<1x32xf32>
    %25 = vector.broadcast %23 : vector<8x1xf32> to vector<8x32xf32>
    %26 = vector.broadcast %24 : vector<1x32xf32> to vector<8x32xf32>
    %27 = arith.mulf %25, %26 : vector<8x32xf32>
    %28 = vector.extract_strided_slice %1 {offsets = [0, 32], sizes = [8, 32], strides = [1, 1]} : vector<8x128xf32> to vector<8x32xf32>
    %cst_13 = arith.constant 0.176776692 : f32
    %29 = vector.broadcast %cst_13 : f32 to vector<8x32xf32>
    %30 = arith.mulf %28, %29 : vector<8x32xf32>
    %31 = vector.extract_strided_slice %3 {offsets = [0, 32], sizes = [8, 32], strides = [1, 1]} : vector<8x128xf32> to vector<8x32xf32>
    %cst_14 = arith.constant dense<0.000000e+00> : vector<8x8xf32>
    %32 = tpu.matmul %30, %31, %cst_14 {dimension_numbers = #tpu.dot_dimension_numbers<[1], [1], [0], [0], [0, 0, 1, 0], [], []>} : vector<8x32xf32>, vector<8x32xf32>, vector<8x8xf32> -> vector<8x8xf32>
    %cst_15 = arith.constant dense<0xFF800000> : vector<8xf32>
    %33 = vector.multi_reduction <maximumf>, %32, %cst_15 [1] : vector<8x8xf32> to vector<8xf32>
    %34 = vector.shape_cast %33 : vector<8xf32> to vector<8x1xf32>
    %35 = vector.broadcast %34 : vector<8x1xf32> to vector<8x8xf32>
    %36 = arith.subf %32, %35 : vector<8x8xf32>
    %37 = math.exp %36 : vector<8x8xf32>
    %cst_16 = arith.constant dense<0.000000e+00> : vector<8xf32>
    %38 = vector.multi_reduction <add>, %37, %cst_16 [1] : vector<8x8xf32> to vector<8xf32>
    %39 = vector.shape_cast %38 : vector<8xf32> to vector<8x1xf32>
    %40 = vector.broadcast %39 : vector<8x1xf32> to vector<8x8xf32>
    %41 = arith.divf %37, %40 : vector<8x8xf32>
    %cst_17 = arith.constant dense<0.000000e+00> : vector<8xf32>
    %42 = vector.multi_reduction <add>, %41, %cst_17 [1] : vector<8x8xf32> to vector<8xf32>
    %43 = vector.shape_cast %42 : vector<8xf32> to vector<8x1xf32>
    %44 = vector.extract_strided_slice %7 {offsets = [0, 32], sizes = [1, 32], strides = [1, 1]} : vector<1x128xf32> to vector<1x32xf32>
    %45 = vector.broadcast %43 : vector<8x1xf32> to vector<8x32xf32>
    %46 = vector.broadcast %44 : vector<1x32xf32> to vector<8x32xf32>
    %47 = arith.mulf %45, %46 : vector<8x32xf32>
    %48 = vector.extract_strided_slice %1 {offsets = [0, 64], sizes = [8, 32], strides = [1, 1]} : vector<8x128xf32> to vector<8x32xf32>
    %cst_18 = arith.constant 0.176776692 : f32
    %49 = vector.broadcast %cst_18 : f32 to vector<8x32xf32>
    %50 = arith.mulf %48, %49 : vector<8x32xf32>
    %51 = vector.extract_strided_slice %3 {offsets = [0, 64], sizes = [8, 32], strides = [1, 1]} : vector<8x128xf32> to vector<8x32xf32>
    %cst_19 = arith.constant dense<0.000000e+00> : vector<8x8xf32>
    %52 = tpu.matmul %50, %51, %cst_19 {dimension_numbers = #tpu.dot_dimension_numbers<[1], [1], [0], [0], [0, 0, 1, 0], [], []>} : vector<8x32xf32>, vector<8x32xf32>, vector<8x8xf32> -> vector<8x8xf32>
    %cst_20 = arith.constant dense<0xFF800000> : vector<8xf32>
    %53 = vector.multi_reduction <maximumf>, %52, %cst_20 [1] : vector<8x8xf32> to vector<8xf32>
    %54 = vector.shape_cast %53 : vector<8xf32> to vector<8x1xf32>
    %55 = vector.broadcast %54 : vector<8x1xf32> to vector<8x8xf32>
    %56 = arith.subf %52, %55 : vector<8x8xf32>
    %57 = math.exp %56 : vector<8x8xf32>
    %cst_21 = arith.constant dense<0.000000e+00> : vector<8xf32>
    %58 = vector.multi_reduction <add>, %57, %cst_21 [1] : vector<8x8xf32> to vector<8xf32>
    %59 = vector.shape_cast %58 : vector<8xf32> to vector<8x1xf32>
    %60 = vector.broadcast %59 : vector<8x1xf32> to vector<8x8xf32>
    %61 = arith.divf %57, %60 : vector<8x8xf32>
    %cst_22 = arith.constant dense<0.000000e+00> : vector<8xf32>
    %62 = vector.multi_reduction <add>, %61, %cst_22 [1] : vector<8x8xf32> to vector<8xf32>
    %63 = vector.shape_cast %62 : vector<8xf32> to vector<8x1xf32>
    %64 = vector.extract_strided_slice %7 {offsets = [0, 64], sizes = [1, 32], strides = [1, 1]} : vector<1x128xf32> to vector<1x32xf32>
    %65 = vector.broadcast %63 : vector<8x1xf32> to vector<8x32xf32>
    %66 = vector.broadcast %64 : vector<1x32xf32> to vector<8x32xf32>
    %67 = arith.mulf %65, %66 : vector<8x32xf32>
    %68 = vector.extract_strided_slice %1 {offsets = [0, 96], sizes = [8, 32], strides = [1, 1]} : vector<8x128xf32> to vector<8x32xf32>
    %cst_23 = arith.constant 0.176776692 : f32
    %69 = vector.broadcast %cst_23 : f32 to vector<8x32xf32>
    %70 = arith.mulf %68, %69 : vector<8x32xf32>
    %71 = vector.extract_strided_slice %3 {offsets = [0, 96], sizes = [8, 32], strides = [1, 1]} : vector<8x128xf32> to vector<8x32xf32>
    %cst_24 = arith.constant dense<0.000000e+00> : vector<8x8xf32>
    %72 = tpu.matmul %70, %71, %cst_24 {dimension_numbers = #tpu.dot_dimension_numbers<[1], [1], [0], [0], [0, 0, 1, 0], [], []>} : vector<8x32xf32>, vector<8x32xf32>, vector<8x8xf32> -> vector<8x8xf32>
    %cst_25 = arith.constant dense<0xFF800000> : vector<8xf32>
    %73 = vector.multi_reduction <maximumf>, %72, %cst_25 [1] : vector<8x8xf32> to vector<8xf32>
    %74 = vector.shape_cast %73 : vector<8xf32> to vector<8x1xf32>
    %75 = vector.broadcast %74 : vector<8x1xf32> to vector<8x8xf32>
    %76 = arith.subf %72, %75 : vector<8x8xf32>
    %77 = math.exp %76 : vector<8x8xf32>
    %cst_26 = arith.constant dense<0.000000e+00> : vector<8xf32>
    %78 = vector.multi_reduction <add>, %77, %cst_26 [1] : vector<8x8xf32> to vector<8xf32>
    %79 = vector.shape_cast %78 : vector<8xf32> to vector<8x1xf32>
    %80 = vector.broadcast %79 : vector<8x1xf32> to vector<8x8xf32>
    %81 = arith.divf %77, %80 : vector<8x8xf32>
    %cst_27 = arith.constant dense<0.000000e+00> : vector<8xf32>
    %82 = vector.multi_reduction <add>, %81, %cst_27 [1] : vector<8x8xf32> to vector<8xf32>
    %83 = vector.shape_cast %82 : vector<8xf32> to vector<8x1xf32>
    %84 = vector.extract_strided_slice %7 {offsets = [0, 96], sizes = [1, 32], strides = [1, 1]} : vector<1x128xf32> to vector<1x32xf32>
    %85 = vector.broadcast %83 : vector<8x1xf32> to vector<8x32xf32>
    %86 = vector.broadcast %84 : vector<1x32xf32> to vector<8x32xf32>
    %87 = arith.mulf %85, %86 : vector<8x32xf32>
    %88 = tpu.concatenate %27, %47, %67, %87 in 1 : vector<8x32xf32>, vector<8x32xf32>, vector<8x32xf32>, vector<8x32xf32> -> vector<8x128xf32>
    %c0_28 = arith.constant 0 : index
    %c0_29 = arith.constant 0 : index
    %c0_30 = arith.constant 0 : index
    %89 = vector.load %arg4[%c0_28, %c0_29, %c0_30] : memref<1x8x128xf32, #tpu.memory_space<vmem>>, vector<1x8x128xf32>
    %90 = vector.shape_cast %89 : vector<1x8x128xf32> to vector<8x128xf32>
    %91 = vector.shape_cast %88 : vector<8x128xf32> to vector<1x8x128xf32>
    tpu.vector_store %arg4[%c0_28, %c0_29, %c0_30], %91 {strides = array<i32>} : memref<1x8x128xf32, #tpu.memory_space<vmem>>, vector<1x8x128xf32>,
    return
  }
  func.func @transform_0(%arg0: i32) -> (i32, i32, i32) {
    %c0_i32 = arith.constant 0 : i32
    %c0_i32_0 = arith.constant 0 : i32
    %c0_i32_1 = arith.constant 0 : i32
    return %arg0, %c0_i32, %c0_i32_0 : i32, i32, i32
  }
  func.func @transform_1(%arg0: i32) -> (i32, i32, i32) {
    %c0_i32 = arith.constant 0 : i32
    %c0_i32_0 = arith.constant 0 : i32
    %c0_i32_1 = arith.constant 0 : i32
    return %arg0, %c0_i32, %c0_i32_0 : i32, i32, i32
  }
  func.func @transform_2(%arg0: i32) -> (i32, i32, i32) {
    %c0_i32 = arith.constant 0 : i32
    %c0_i32_0 = arith.constant 0 : i32
    %c0_i32_1 = arith.constant 0 : i32
    return %arg0, %c0_i32, %c0_i32_0 : i32, i32, i32
  }
  func.func @transform_3(%arg0: i32) -> (i32, i32, i32) {
    %c0_i32 = arith.constant 0 : i32
    %c0_i32_0 = arith.constant 0 : i32
    %c0_i32_1 = arith.constant 0 : i32
    return %arg0, %c0_i32, %c0_i32_0 : i32, i32, i32
  }
}

</mosaic_0001>

<bundles_post_ra>
// kernel: tpu_custom_call.1
= control target key start
LH: loop header
LB: loop body
LE: loop exit
PB: predicated region body
PF: predicated region fallthrough
CT: control target
= control target key end

     0   :  { %s1324_s0 = inlined_call_operand.hbm [shape: f32[2,8,128], index: 0, kind: input, shape index: {}]   ;;  %s1325_s1 = inlined_call_operand.hbm [shape: f32[2,8,128], index: 1, kind: input, shape index: {}]   ;;  %s1326_s2 = inlined_call_operand.hbm [shape: f32[2,8,128], index: 2, kind: input, shape index: {}]   ;;  %s1327_s3 = inlined_call_operand.hbm [shape: f32[2,8,128], index: 3, kind: output, shape index: {}]  }
   0x1   :  { %1331 = sst [smem:[#allocation13_spill]] %s1324_s0 }
   0x2   :  { %1332 = sst [smem:[#allocation14_spill]] %s1325_s1 }
   0x3   :  { %8 = vsyncpa [#allocation3], 0 }
   0x4   :  { %10 = vsyncpa [#allocation3 + $0x1], 0 }
   0x5   :  { %11 = vsyncpa [#allocation6], 0 }
   0x6   :  { %13 = vsyncpa [#allocation6 + $0x1], 0 }
   0x7   :  { %14 = vsyncpa [#allocation4], 0 }
   0x8   :  { %16 = vsyncpa [#allocation4 + $0x1], 0  ;;  %s1086_s12 = smov 0   ;;  %s1088_s13 = smov 0  }
   0x9   :  { %s1090_s14 = smov 0   ;;  %s1092_s15 = smov 0  }
   0xa LB: > { %s1107_s16 = sadd.s32 4294967295, %s1055_s15   ;;  %s772_s17 = sadd.s32 4294967294, %s1055_s15   ;;  %s1055_s15 = sphi %s1092_s15, %s1353_s15   ;;  %s1051_s14 = sphi %s1090_s14, %s1352_s14   ;;  %s1047_s13 = sphi %s1088_s13, %s1351_s13   ;;  %s1043_s12 = sphi %s1086_s12, %s1350_s12  }
   0xb   : > { %s1111_s18 = sadd.s32 1, %s1055_s15   ;;  %s29_s19 = sadd.s32 1, %s1051_s14 }
   0xc   : > { %s26_s20 = ssub.s32 %s1055_s15, %s1111_s18  ;;  %p36_p0 = scmp.ne.s32.totalorder %s1051_s14, %s1047_s13 }
   0xd   : > { %p27_p1 = scmp.eq.s32.totalorder %s26_s20, 0  ;;  %p37_p2 = scmp.eq.s32.totalorder %s1055_s15, 0 }
   0xe   : > { %p42_p3 = scmp.ne.s32.totalorder %s1047_s13, %s1043_s12  ;;  %p43_p4 = scmp.eq.s32.totalorder %s1107_s16, 0 }
   0xf   : > { %s1123_s21 = scalar_select %p27_p1, %s1051_s14, %s29_s19  }
  0x10   : > { %p38_p5 = por %p37_p2, %p36_p0  ;;  %p1125_p6 = por %p43_p4, %p42_p3 }
  0x11   : > { %1333 = sst [smem:[#allocation12_spill]] %s1123_s21  ;;  %p118_p7 = scmp.eq.s32.totalorder %s1107_s16, 1 }
  0x12   : > { %s1334_s22 = scalar_select %p1125_p6, 1, 0 }
  0x13   : > { %p124_p8 = scmp.eq.s32.totalorder %s772_s17, 1  ;;  %p848_p10 = scmp.lt.s32.totalorder %s1055_s15, 2 }
  0x14   : > { %p1132_p11 = por %p118_p7, %p36_p0  ;;  %s1328_s25 = sand.u32 1, %s1051_s14  }
  0x15   : > { %p1136_p12 = por %p124_p8, %p42_p3  ;;  %s1142_s26 = sshll.u32 %s1055_s15, 7 }
  0x16   : > { %s1335_s23 = scalar_select %p1132_p11, 1, 0 }
  0x17   : > { %s1336_s24 = scalar_select %p1136_p12, 1, 0 }
  0x18   : > { %s1146_s27 = sshll.u32 %s1328_s25, 3  ;;  %p1148_p13 = pnand %p848_p10, %p38_p5 }
  0x19   : > { %s162_s29 = sand.u32 1, %s1055_s15   ;;  %s1338_s1 = sld [smem:[#allocation14_spill]] }
  0x1a   : > { %s166_s6 = scalar_lea.vmem [#allocation5], %s1146_s27  ;;  %s1161_s8 = scalar_lea.sflag [#allocation6], %s162_s29 }
  0x1b   : > { %s173_s7 = sshll.u32 %s166_s6, 4  ;;  %p1167_p2 = pneg %p1148_p13  ;;  %s174_s7 = int_to_ptr.vmem [resolvable:$true] %s173_s7 }
  0x1f   : > { %s1157_s5 = scalar_lea.hbm %s1338_s1, %s1142_s26  ;;  %s908_s19 = scalar_lea.hbm %s1338_s1, 256 }
  0x20   : > { %s903_s9 = scalar_lea.hbm %s1157_s5, 128  ;;  %p909_p5 = scmp.lt.s32.totalorder %s1157_s5, %s1338_s1 }
  0x21   : > { %p904_p1 = scmp.ne.s32.totalorder %s1157_s5, %s903_s9  ;;  %p910_p7 = scmp.lt.s32.totalorder %s908_s19, %s903_s9 }
  0x23   : > { %p906_p3 = pnand %p1167_p2, %p904_p1  ;;  %p911_p8 = por %p910_p7, %p909_p5 }
  0x25   : > { %p907_p4 = pneg %p906_p3 }
  0x27   : > { %p912_p10 = pnand %p911_p8, %p907_p4 }
  0x29   : > { %915 = shalt.err (!%p912_p10)
}
  0x2a   : > { %s916_s29 = scalar_lea.vmem %s174_s7, 128  ;;  %s1057_s4 = smov [#allocation5]  }
  0x2b   : > { %p917_p9 = scmp.ne.s32.totalorder %s174_s7, %s916_s29  ;;  %s921_s6 = sshll.u32 %s1057_s4, 4  ;;  %s922_s6 = int_to_ptr.vmem [resolvable:$false] %s921_s6 }
  0x2c   : > { %s923_s25 = scalar_lea.vmem %s922_s6, 256  ;;  %p924_p1 = scmp.lt.s32.totalorder %s174_s7, %s922_s6 }
  0x2d   : > { %p919_p0 = pnand %p917_p9, %p1167_p2  ;;  %p925_p3 = scmp.lt.s32.totalorder %s923_s25, %s916_s29 }
  0x2f   : > { %p920_p12 = pneg %p919_p0  ;;  %p926_p11 = por %p925_p3, %p924_p1 }
  0x31   : > { %p927_p6 = pnand %p926_p11, %p920_p12 }
  0x33   : > { %930 = shalt.err (!%p927_p6)
}
  0x34   : > { %840 = dma.hbm_to_vmem [thread:$0]  (!%p1148_p13), %s1157_s5, 128, %s174_s7, %s1161_s8  }
  0x35   : > { %p196_p9 = scmp.lt.s32.totalorder %s1055_s15, 3  ;;  %s1340_s0 = sld [smem:[#allocation13_spill]] }
  0x36   : > { %p1341_p0 = scmp.ge.s32.totalorder %s1055_s15, 1  ;;  %s148_s19 = scalar_lea.vmem [#allocation2], %s1146_s27 }
  0x37   : > { %s155_s20 = sshll.u32 %s148_s19, 4  ;;  %s1343_s30 = sand.u32 1, %s1051_s14   ;;  %s156_s20 = int_to_ptr.vmem [resolvable:$true] %s155_s20 }
  0x38   : > { %p1195_p6 = pnand %p1341_p0, %p196_p9  ;;  %s145_s29 = scalar_lea.sflag [#allocation3], %s1343_s30 }
  0x3a   : > { %s1342_s25 = scalar_select %p1195_p6, 1, 0 }
  0x3b   : > { %s1191_s17 = scalar_lea.hbm %s1340_s0, %s1142_s26  ;;  %s936_s6 = scalar_lea.hbm %s1340_s0, 256 }
  0x3c   : > { %s931_s5 = scalar_lea.hbm %s1191_s17, 128  ;;  %p937_p5 = scmp.lt.s32.totalorder %s1191_s17, %s1340_s0 }
  0x3d   : > { %p932_p11 = scmp.ne.s32.totalorder %s1191_s17, %s931_s5  ;;  %p938_p7 = scmp.lt.s32.totalorder %s936_s6, %s931_s5 }
  0x3f   : > { %p934_p12 = pnand %p932_p11, %p1167_p2  ;;  %p939_p8 = por %p938_p7, %p937_p5 }
  0x41   : > { %p935_p4 = pneg %p934_p12 }
  0x43   : > { %p940_p10 = pnand %p939_p8, %p935_p4 }
  0x45   : > { %943 = shalt.err (!%p940_p10)
}
  0x46   : > { %s944_s19 = scalar_lea.vmem %s156_s20, 128  ;;  %s1058_s30 = smov [#allocation2]  }
  0x47   : > { %p945_p1 = scmp.ne.s32.totalorder %s156_s20, %s944_s19  ;;  %s949_s1 = sshll.u32 %s1058_s30, 4  ;;  %s950_s1 = int_to_ptr.vmem [resolvable:$false] %s949_s1 }
  0x48   : > { %s951_s21 = scalar_lea.vmem %s950_s1, 256  ;;  %p952_p0 = scmp.lt.s32.totalorder %s156_s20, %s950_s1 }
  0x49   : > { %p947_p3 = pnand %p945_p1, %p1167_p2  ;;  %p953_p11 = scmp.lt.s32.totalorder %s951_s21, %s944_s19 }
  0x4b   : > { %p948_p9 = pneg %p947_p3  ;;  %p954_p12 = por %p953_p11, %p952_p0 }
  0x4d   : > { %p955_p6 = pnand %p954_p12, %p948_p9 }
  0x4f   : > { %958 = shalt.err (!%p955_p6)
}
  0x50   : > { %837 = dma.hbm_to_vmem [thread:$0]  (!%p1148_p13), %s1191_s17, 128, %s156_s20, %s145_s29  }
  0x51   : > { %s189_s4 = scalar_lea.hbm %s1326_s2, %s1142_s26  ;;  %s184_s6 = scalar_lea.vmem [#allocation7], %s1146_s27 }
  0x52   : > { %s191_s9 = sshll.u32 %s184_s6, 4  ;;  %s959_s11 = scalar_lea.hbm %s189_s4, 128  ;;  %s192_s9 = int_to_ptr.vmem [resolvable:$true] %s191_s9 }
  0x53   : > { %p960_p4 = scmp.ne.s32.totalorder %s189_s4, %s959_s11  ;;  %s964_s19 = scalar_lea.hbm %s1326_s2, 256 }
  0x54   : > { %p965_p6 = scmp.lt.s32.totalorder %s189_s4, %s1326_s2  ;;  %p966_p8 = scmp.lt.s32.totalorder %s964_s19, %s959_s11 }
  0x55   : > { %p962_p5 = pnand %p960_p4, %p1167_p2 }
  0x56   : > { %p967_p10 = por %p966_p8, %p965_p6 }
  0x57   : > { %p963_p7 = pneg %p962_p5 }
  0x59   : > { %p968_p1 = pnand %p967_p10, %p963_p7 }
  0x5b   : > { %971 = shalt.err (!%p968_p1)
}
  0x5c   : > { %s972_s26 = scalar_lea.vmem %s192_s9, 128  ;;  %s1059_s27 = smov [#allocation7]  }
  0x5d   : > { %p973_p3 = scmp.ne.s32.totalorder %s192_s9, %s972_s26  ;;  %s977_s17 = sshll.u32 %s1059_s27, 4  ;;  %s978_s17 = int_to_ptr.vmem [resolvable:$false] %s977_s17 }
  0x5e   : > { %s979_s20 = scalar_lea.vmem %s978_s17, 256  ;;  %p980_p11 = scmp.lt.s32.totalorder %s192_s9, %s978_s17 }
  0x5f   : > { %p975_p9 = pnand %p973_p3, %p1167_p2  ;;  %p981_p12 = scmp.lt.s32.totalorder %s979_s20, %s972_s26 }
  0x61   : > { %p976_p0 = pneg %p975_p9  ;;  %p982_p4 = por %p981_p12, %p980_p11 }
  0x63   : > { %p983_p5 = pnand %p982_p4, %p976_p0 }
  0x65   : > { %986 = shalt.err (!%p983_p5)
}
  0x66   : > { %843 = dma.hbm_to_vmem [thread:$0]  (!%p1148_p13), %s189_s4, 128, %s192_s9, %s1161_s8  }
  0x67   : > { %p1344_p7 = scmp.ne.s32.totalorder %s1342_s25, 0 }
  0x68   : > { %s1239_s0 = sand.u32 (!%p1344_p7), 1, %s1047_s13   ;;  %p1345_p2 = scmp.ne.s32.totalorder (!%p1344_p7), %s1334_s22, 0 }
  0x69   : > { %200 = sbr.rel (%p1344_p7) target bundleno = 904 (0x388), region = 32  ;;  %s1242_s10 = sshll.u32 (!%p1344_p7), %s1239_s0, 3 }
  0x6a   : > { %s203_s29 = scalar_lea.sflag (!%p1344_p7), [#allocation3], %s1239_s0  ;;  %s206_s5 = scalar_lea.vmem (!%p1344_p7), [#allocation2], %s1242_s10 }
  0x6e   : > { %1030 = dma.done.wait (%p1345_p2), %s203_s29, 128  }
  0x6f   : > { %1032 = vsyncadd (%p1345_p2), %s203_s29, 4294967168  ;;  %s211_s28 = sand.u32 1, %s1107_s16   ;;  %s215_s25 = scalar_lea.vmem [#allocation5], %s1242_s10 }
  0x70   : > { %s212_s8 = scalar_lea.sflag [#allocation6], %s211_s28 }
  0x71   : > { %1034 = dma.done.wait (%p1345_p2), %s212_s8, 256  }
  0x72   : > { %1036 = vsyncadd (%p1345_p2), %s212_s8, 4294967040  ;;  %v1060_v0 = vmov 0.0   ;;  %vm1061_vm0 = vmmov 0   ;;  %vm267_vm1 = vcmask 261120   ;;  %v258_v1 = vld [vmem:[%s215_s25] sm:$0xff]  ;;  %v257_v2 = vld [vmem:[%s206_s5] sm:$0xff] }
  0x73   : > { %806 = vmatprep.subr.mxu0 %v1060_v0  ;;  %808 = vmatprep.mubr.msk.f32.mxu0 %vm1061_vm0, %v1060_v0  ;;  %s1062_s7 = smov 96   ;;  %v266_v3 = vmul.f32 0.17677669, %v257_v2  ;;  %s1063_s4 = smov 64   ;;  %vm344_vm2 = vcmask 64512   ;;  %vm640_vm3 = vcmask 523264  }
  0x74   : > { %811 = vmatprep.subr.mxu1 %v1060_v0  ;;  %813 = vmatprep.mubr.msk.f32.mxu1 %vm1061_vm0, %v1060_v0  ;;  %s1064_s22 = smov 32   ;;  %s224_s6 = scalar_lea.vmem [#allocation7], %s1242_s10  ;;  %vm642_vm4 = vcmask 785408  }
  0x75   : > { %362 = vrot.lane.b32.xlu0 %v258_v1, %s1062_s7  ;;  %807 = vmatpush3.xpose.msk.msra.mxu0 %vm267_vm1, %v258_v1  ;;  %v259_v58 = vld [vmem:[%s224_s6] sm:$0xff]  ;;  %s795_s9 = sshll.u32 %s1107_s16, 7  ;;  %s256_s11 = scalar_lea.vmem [#allocation8], %s1242_s10 }
  0x76   : > { %455 = vrot.lane.b32.xlu1 %v258_v1, %s1063_s4  ;;  %816 = vmatprep.subr.mxu0 %v1060_v0  ;;  %v260_v59 = vrot.slane %v259_v58, 4  ;;  %s659_s1 = sshll.u32 %s256_s11, 4  ;;  %s1287_s30 = scalar_lea.hbm %s1327_s3, %s795_s9  ;;  %s660_s1 = int_to_ptr.vmem [resolvable:$true] %s659_s1 }
  0x77   : > { %s646_s26 = scalar_lea.sflag [#allocation4], %s1239_s0  ;;  %s987_s27 = scalar_lea.vmem %s660_s1, 128 }
  0x78   : > { %809 = vmatmul.mubr.msk.f32.vlgmr.msra.gmra.mxu0 %vm267_vm1, %v266_v3  ;;  %v261_v60 = vadd.f32 %v260_v59, %v259_v58  ;;  %p988_p13 = scmp.ne.s32.totalorder %s660_s1, %s987_s27  ;;  %p1346_p6 = scmp.ne.s32.totalorder %s1335_s23, 0 }
  0x79   : > { %360 = vrot.lane.b32.xlu0 %v266_v3, %s1062_s7  ;;  %818 = vmatprep.mubr.msk.f32.mxu0 %vm1061_vm0, %v1060_v0  ;;  %s1065_s16 = smov [#allocation8]  }
  0x7a   : > { %548 = vrot.lane.b32.xlu1 %v258_v1, %s1064_s22  ;;  %v262_v61 = vrot.slane %v261_v60, 2  ;;  %p989_p8 = pnand %p988_p13, %p1346_p6  ;;  %s991_s17 = sshll.u32 %s1065_s16, 4  ;;  %s992_s17 = int_to_ptr.vmem [resolvable:$false] %s991_s17 }
  0x7b   : > { %s993_s20 = scalar_lea.vmem %s992_s17, 256  ;;  %p994_p1 = scmp.lt.s32.totalorder %s660_s1, %s992_s17 }
  0x7c   : > { %v263_v62 = vadd.f32 %v262_v61, %v261_v60  ;;  %p990_p10 = pneg %p989_p8  ;;  %p995_p3 = scmp.lt.s32.totalorder %s993_s20, %s987_s27 }
  0x7d   : > { %453 = vrot.lane.b32.xlu0 %v266_v3, %s1063_s4 }
  0x7e   : > { %546 = vrot.lane.b32.xlu1 %v266_v3, %s1064_s22  ;;  %v264_v63 = vrot.slane %v263_v62, 1  ;;  %p996_p9 = por %p995_p3, %p994_p1 }
  0x80   : > { %v265_v2 = vadd.f32 %v264_v63, %v263_v62  ;;  %p997_p0 = pnand %p996_p9, %p990_p10 }
  0xe7   : > { %v363_v4 = vpop.permute.xlu0 %362 }
  0xe8   : > { %812 = vmatpush3.xpose.msk.msra.mxu1 %vm267_vm1, %v363_v4  ;;  %v456_v5 = vpop.permute.xlu1 %455 }
  0xe9   : > { %817 = vmatpush3.xpose.msk.msra.mxu0 %vm267_vm1, %v456_v5  ;;  %821 = vmatprep.subr.mxu1 %v1060_v0 }
  0xeb   : > { %v361_v6 = vpop.permute.xlu0 %360 }
  0xec   : > { %814 = vmatmul.mubr.msk.f32.vlgmr.msra.gmra.mxu1 %vm267_vm1, %v361_v6  ;;  %v549_v7 = vpop.permute.xlu1 %548 }
  0xed   : > { %822 = vmatpush3.xpose.msk.msra.mxu1 %vm267_vm1, %v549_v7  ;;  %823 = vmatprep.mubr.msk.f32.mxu1 %vm1061_vm0, %v1060_v0 }
  0xef   : > { %v454_v8 = vpop.permute.xlu0 %453 }
  0xf0   : > { %819 = vmatmul.mubr.msk.f32.vlgmr.msra.gmra.mxu0 %vm267_vm1, %v454_v8  ;;  %v547_v9 = vpop.permute.xlu1 %546 }
  0xf1   : > { %824 = vmatmul.mubr.msk.f32.vlgmr.msra.gmra.mxu1 %vm267_vm1, %v547_v9 }
 0x138   : > { %v340_v10 = vpop.f32.mrf.mxu0 }
 0x139   : > { %v345_v11 = vsel %vm344_vm2, %v340_v10, -inf }
 0x13a   : > { %346 = vmax.xlane.f32.xlu0 %v345_v11  ;;  %v810_v12 = vpop.f32.mrf.mxu0 }
 0x1ac   : > { %v434_v13 = vpop.f32.mrf.mxu1 }
 0x1ad   : > { %v438_v14 = vsel %vm344_vm2, %v434_v13, -inf }
 0x1ae   : > { %439 = vmax.xlane.f32.xlu1 %v438_v14  ;;  %v815_v15 = vpop.f32.mrf.mxu1 }
 0x1b0   : > { %v527_v16 = vpop.f32.mrf.mxu0 }
 0x1b1   : > { %v620_v17 = vpop.f32.mrf.mxu1  ;;  %v531_v18 = vsel %vm344_vm2, %v527_v16, -inf }
 0x1b2   : > { %532 = vmax.xlane.f32.xlu0 %v531_v18  ;;  %v820_v19 = vpop.f32.mrf.mxu0  ;;  %v624_v21 = vsel %vm344_vm2, %v620_v17, -inf }
 0x1b3   : > { %v825_v20 = vpop.f32.mrf.mxu1 }
 0x1b6   : > { %625 = vmax.xlane.f32.xlu0 %v624_v21 }
 0x1c3   : > { %v347_v22 = vpop.xlane.xlu0 %346 }
 0x1c4   : > { %v348_v23 = vsub.f32 %v340_v10, %v347_v22 }
 0x1c6   : > { %v349_v24 = vmul.f32 1.442695, %v348_v23 }
 0x1c8   : > { %887 = vpow2.f32 %v349_v24 }
 0x1d5   : > { %v888_v25 = vpop.eup %887 }
 0x1d6   : > { %v351_v26 = vsel %vm344_vm2, %v888_v25, 0.0 }
 0x1d7   : > { %352 = vadd.xlane.f32.xlu1 %v351_v26 }
 0x237   : > { %v440_v27 = vpop.xlane.xlu1 %439 }
 0x238   : > { %v441_v28 = vsub.f32 %v434_v13, %v440_v27 }
 0x23a   : > { %v442_v29 = vmul.f32 1.442695, %v441_v28 }
 0x23b   : > { %v533_v30 = vpop.xlane.xlu0 %532 }
 0x23c   : > { %889 = vpow2.f32 %v442_v29  ;;  %v534_v31 = vsub.f32 %v527_v16, %v533_v30 }
 0x23e   : > { %v535_v32 = vmul.f32 1.442695, %v534_v31 }
 0x23f   : > { %v626_v33 = vpop.xlane.xlu0 %625 }
 0x240   : > { %891 = vpow2.f32 %v535_v32  ;;  %v627_v34 = vsub.f32 %v620_v17, %v626_v33 }
 0x242   : > { %v628_v35 = vmul.f32 1.442695, %v627_v34 }
 0x244   : > { %893 = vpow2.f32 %v628_v35 }
 0x249   : > { %v890_v36 = vpop.eup %889 }
 0x24a   : > { %v444_v37 = vsel %vm344_vm2, %v890_v36, 0.0 }
 0x24b   : > { %445 = vadd.xlane.f32.xlu0 %v444_v37 }
 0x24d   : > { %v892_v38 = vpop.eup %891 }
 0x24e   : > { %v537_v39 = vsel %vm344_vm2, %v892_v38, 0.0 }
 0x24f   : > { %538 = vadd.xlane.f32.xlu1 %v537_v39 }
 0x251   : > { %v894_v40 = vpop.eup %893 }
 0x252   : > { %v630_v41 = vsel %vm344_vm2, %v894_v40, 0.0 }
 0x253   : > { %631 = vadd.xlane.f32.xlu0 %v630_v41 }
 0x260   : > { %v353_v42 = vpop.xlane.xlu1 %352 }
 0x261   : > { %895 = vrcp.f32 %v353_v42 }
 0x26e   : > { %v896_v43 = vpop.eup %895 }
 0x26f   : > { %v355_v44 = vmul.f32 %v896_v43, %v888_v25 }
 0x271   : > { %v356_v45 = vsel %vm344_vm2, %v355_v44, 0.0 }
 0x272   : > { %357 = vadd.xlane.f32.xlu1 %v356_v45 }
 0x2d4   : > { %v446_v46 = vpop.xlane.xlu0 %445 }
 0x2d5   : > { %897 = vrcp.f32 %v446_v46 }
 0x2d8   : > { %v539_v47 = vpop.xlane.xlu1 %538 }
 0x2d9   : > { %899 = vrcp.f32 %v539_v47 }
 0x2dc   : > { %v632_v48 = vpop.xlane.xlu0 %631 }
 0x2dd   : > { %901 = vrcp.f32 %v632_v48 }
 0x2e2   : > { %v898_v49 = vpop.eup %897 }
 0x2e3   : > { %v448_v50 = vmul.f32 %v898_v49, %v890_v36 }
 0x2e5   : > { %v449_v51 = vsel %vm344_vm2, %v448_v50, 0.0 }
 0x2e6   : > { %v900_v52 = vpop.eup %899  ;;  %450 = vadd.xlane.f32.xlu0 %v449_v51 }
 0x2e7   : > { %v541_v53 = vmul.f32 %v900_v52, %v892_v38 }
 0x2e9   : > { %v542_v54 = vsel %vm344_vm2, %v541_v53, 0.0 }
 0x2ea   : > { %v902_v55 = vpop.eup %901  ;;  %543 = vadd.xlane.f32.xlu1 %v542_v54 }
 0x2eb   : > { %v634_v56 = vmul.f32 %v902_v55, %v894_v40 }
 0x2ed   : > { %v635_v57 = vsel %vm344_vm2, %v634_v56, 0.0 }
 0x2ee   : > { %636 = vadd.xlane.f32.xlu0 %v635_v57 }
 0x2fb   : > { %v358_v0 = vpop.xlane.xlu1 %357 }
 0x2fc   : > { %v359_v6 = vmul.f32 %v358_v0, %v265_v2 }
 0x36f   : > { %v451_v1 = vpop.xlane.xlu0 %450 }
 0x370   : > { %v452_v4 = vmul.f32 %v451_v1, %v265_v2 }
 0x372   : > { %v639_v8 = vsel %vm267_vm1, %v359_v6, %v452_v4 }
 0x373   : > { %v544_v3 = vpop.xlane.xlu1 %543 }
 0x374   : > { %v545_v5 = vmul.f32 %v544_v3, %v265_v2 }
 0x376   : > { %v641_v10 = vsel %vm640_vm3, %v639_v8, %v545_v5 }
 0x377   : > { %v637_v7 = vpop.xlane.xlu0 %636 }
 0x378   : > { %v638_v9 = vmul.f32 %v637_v7, %v265_v2 }
 0x37a   : > { %v643_v11 = vsel %vm642_vm4, %v641_v10, %v638_v9 }
 0x37b   : > { %644 = vst [vmem:[%s256_s11] sm:$0xff] %v643_v11 }
 0x37c   : > { %1000 = shalt.err (!%p997_p0)
}
 0x37d   : > { %s1001_s10 = scalar_lea.hbm %s1287_s30, 128  ;;  %s1005_s5 = scalar_lea.hbm %s1327_s3, 256 }
 0x37e   : > { %p1002_p11 = scmp.ne.s32.totalorder %s1287_s30, %s1001_s10  ;;  %p1006_p5 = scmp.lt.s32.totalorder %s1287_s30, %s1327_s3 }
 0x37f   : > { %p1007_p7 = scmp.lt.s32.totalorder %s1005_s5, %s1001_s10 }
 0x380   : > { %p1003_p12 = pnand %p1002_p11, %p1346_p6 }
 0x381   : > { %p1008_p2 = por %p1007_p7, %p1006_p5 }
 0x382   : > { %p1004_p4 = pneg %p1003_p12 }
 0x384   : > { %p1009_p13 = pnand %p1008_p2, %p1004_p4 }
 0x386   : > { %1012 = shalt.err (!%p1009_p13)
}
 0x387   : > { %832 = dma.vmem_to_hbm [thread:$0]  (%p1346_p6), %s660_s1, 128, %s1287_s30, %s646_s26  }
 0x388 PF: > { %s671_s25 = sand.u32 1, %s1043_s12   ;;  %p1347_p8 = scmp.ne.s32.totalorder %s1336_s24, 0 }
 0x389   : > { %p1348_p10 = scmp.ge.s32.totalorder %s1055_s15, 2  ;;  %s672_s7 = scalar_lea.sflag [#allocation4], %s671_s25 }
 0x38b   : > { %p845_p1 = pnand %p1348_p10, %p1347_p8 }
 0x38d   : > { %p846_p3 = pneg %p845_p1 }
 0x38f   : > { %1038 = dma.done.wait (%p846_p3), %s672_s7, 128  }
 0x390   : > { %1040 = vsyncadd (%p846_p3), %s672_s7, 4294967168  ;;  %s1349_s4 = sld [smem:[#allocation12_spill]]  ;;  %p19_p9 = scmp.ge.s32.totalorder %s1111_s18, 4  }
 0x391   : > { %s1350_s12 = smov %s1047_s13  ;;  %s1351_s13 = smov %s1051_s14 }
 0x392   : > { %s1353_s15 = smov %s1111_s18  ;;  %21 = sbr.rel (!%p19_p9) target bundleno = 10 (0xa), region = 101 }
 0x396   : > { %s1352_s14 = smov %s1349_s4 }
 0x397   :  { %677 = vsyncpa [#allocation3], 1 }
 0x398   :  { %679 = vsyncpa [#allocation3 + $0x1], 1 }
 0x399   :  { %680 = vsyncpa [#allocation6], 1 }
 0x39a   :  { %682 = vsyncpa [#allocation6 + $0x1], 1 }
 0x39b   :  { %683 = vsyncpa [#allocation4], 1 }
 0x39c   :  { %685 = vsyncpa [#allocation4 + $0x1], 1 }

</bundles_post_ra>
